<compile_context>
chip_gen: v6e
topology: v6e:2x2x1
jax: 0.10.0
libtpu: 0.0.40
codegen_flags: <defaults>
</compile_context>

<pallas_src>
import jax
import jax.numpy as jnp
from jax.experimental import pallas as pl
from jax.experimental.pallas import tpu as pltpu

# ---- small config (consistent with a tiny Llama) -----------------------------
BATCH = 2
SEQ = 8
N_HEADS = 4
N_KV_HEADS = 2
HEAD_DIM = 8
MAX_POS = 16             # cached table length (>= SEQ + seqlen_offset)
ROPE_BASE = 10000.0
SCALING_FACTOR = 1.0
ATTENTION_SCALING = 1.0  # 'default' rope_type


# ---- cos/sin cache (PyTorch: _update_cos_sin_cache) --------------------------
def rope_cos_sin_cache(seq_len, dim, *, base=ROPE_BASE,
                       scaling_factor=SCALING_FACTOR,
                       attention_scaling=ATTENTION_SCALING,
                       dtype=jnp.float32):
    # default rope init: inv_freq = base ** (-2i / dim)
    inv_freq = 1.0 / (base ** (jnp.arange(0, dim, 2, dtype=jnp.float32) / dim))
    t = jnp.arange(seq_len, dtype=jnp.float32) / scaling_factor   # pos_idx_in_fp32
    freqs = jnp.outer(t, inv_freq)                                # (seq_len, dim // 2)
    cos = (jnp.cos(freqs) * attention_scaling).astype(dtype)
    sin = (jnp.sin(freqs) * attention_scaling).astype(dtype)
    return cos, sin


# ---- fused Pallas kernel: rotate q AND k in one invocation --------------------
def _rope_qk_kernel(q_ref, k_ref, cos_ref, sin_ref, qo_ref, ko_ref):
    # cos/sin arrive pre-broadcast-shaped as (1, S, 1, D//2) from the wrapper so
    # the in-kernel multiply is a plain leading-dim + sublane broadcast.
    c = cos_ref[...].astype(jnp.float32)            # (1, S, 1, D//2)
    s = sin_ref[...].astype(jnp.float32)
    d2 = cos_ref.shape[-1]

    def rotate(x_ref, o_ref):
        x = x_ref[...].astype(jnp.float32)          # (B, S, H, D)  f32 compute
        x1 = x[..., :d2]                            # first half of head dim
        x2 = x[..., d2:]                            # second half
        # non-interleaved (NeoX) rotation: out = [x1*c - x2*s, x2*c + x1*s]
        o_ref[:, :, :, 0:d2] = (x1 * c - x2 * s).astype(o_ref.dtype)
        o_ref[:, :, :, d2:2 * d2] = (x2 * c + x1 * s).astype(o_ref.dtype)

    rotate(q_ref, qo_ref)
    rotate(k_ref, ko_ref)


def llama_rotary_embedding(q, k, cos_cached, sin_cached, seqlen_offset=0):
    """Forward of LlamaRotaryEmbedding: returns (rotated q, rotated k)."""
    B, S, _, D = q.shape
    assert k.shape[0] == B and k.shape[1] == S and k.shape[3] == D
    # PyTorch: apply_rotary_emb_func(x, self._cos_cached[seqlen_offset:], ...)
    cos = cos_cached[seqlen_offset:seqlen_offset + S][None, :, None, :]  # (1,S,1,D//2)
    sin = sin_cached[seqlen_offset:seqlen_offset + S][None, :, None, :]

    vmem = pl.BlockSpec(memory_space=pltpu.MemorySpace.VMEM)   # whole array in VMEM
    return pl.pallas_call(
        _rope_qk_kernel,
        out_shape=(jax.ShapeDtypeStruct(q.shape, q.dtype),
                   jax.ShapeDtypeStruct(k.shape, k.dtype)),
        in_specs=[vmem, vmem, vmem, vmem],
        out_specs=(vmem, vmem),
    )(q, k, cos, sin)


# ---- pure-JAX reference for a correctness check --------------------------------
def _rope_reference(q, k, cos, sin):
    d2 = cos.shape[-1]
    c = cos[None, :, None, :].astype(jnp.float32)
    s = sin[None, :, None, :].astype(jnp.float32)

    def rot(x):
        xf = x.astype(jnp.float32)
        x1, x2 = xf[..., :d2], xf[..., d2:]
        return jnp.concatenate([x1 * c - x2 * s, x2 * c + x1 * s],
                               axis=-1).astype(x.dtype)

    return rot(q), rot(k)


if __name__ == "__main__":
    root = jax.random.PRNGKey(0)
    kq, kk = jax.random.split(root)
    q = jax.random.normal(kq, (BATCH, SEQ, N_HEADS, HEAD_DIM), jnp.float32)
    k = jax.random.normal(kk, (BATCH, SEQ, N_KV_HEADS, HEAD_DIM), jnp.float32)

    # build the cache ONCE (mirrors the persistent _cos_cached/_sin_cached buffers)
    cos_cached, sin_cached = rope_cos_sin_cache(MAX_POS, HEAD_DIM, dtype=q.dtype)

    fwd = jax.jit(llama_rotary_embedding, static_argnames="seqlen_offset")
    q_rot, k_rot = fwd(q, k, cos_cached, sin_cached, seqlen_offset=0)
    q_rot, k_rot = jax.block_until_ready((q_rot, k_rot))

    assert q_rot.shape == q.shape and q_rot.dtype == q.dtype
    assert k_rot.shape == k.shape and k_rot.dtype == k.dtype
    q_exp, k_exp = _rope_reference(q, k, cos_cached[:SEQ], sin_cached[:SEQ])
    assert jnp.allclose(q_rot, q_exp, atol=1e-5, rtol=1e-5)
    assert jnp.allclose(k_rot, k_exp, atol=1e-5, rtol=1e-5)
    assert bool(jnp.all(jnp.isfinite(q_rot))) and bool(jnp.all(jnp.isfinite(k_rot)))
    print("KERNEL_OK")
</pallas_src>

<mosaic_0001>
module attributes {stable_mosaic.version = 11 : i64} {
  func.func @_rope_qk_kernel(%arg0: memref<2x8x4x8xf32, #tpu.memory_space<vmem>>, %arg1: memref<2x8x2x8xf32, #tpu.memory_space<vmem>>, %arg2: memref<1x8x1x4xf32, #tpu.memory_space<vmem>>, %arg3: memref<1x8x1x4xf32, #tpu.memory_space<vmem>>, %arg4: memref<2x8x4x8xf32, #tpu.memory_space<vmem>>, %arg5: memref<2x8x2x8xf32, #tpu.memory_space<vmem>>) attributes {dimension_semantics = [], scalar_prefetch = 0 : i64, scratch_operands = 0 : i64, tpu.core_type = #tpu.core_type<tc>} {
    %c0 = arith.constant 0 : index
    %c0_0 = arith.constant 0 : index
    %c0_1 = arith.constant 0 : index
    %c0_2 = arith.constant 0 : index
    %0 = vector.load %arg2[%c0, %c0_0, %c0_1, %c0_2] : memref<1x8x1x4xf32, #tpu.memory_space<vmem>>, vector<1x8x1x4xf32>
    %c0_3 = arith.constant 0 : index
    %c0_4 = arith.constant 0 : index
    %c0_5 = arith.constant 0 : index
    %c0_6 = arith.constant 0 : index
    %1 = vector.load %arg3[%c0_3, %c0_4, %c0_5, %c0_6] : memref<1x8x1x4xf32, #tpu.memory_space<vmem>>, vector<1x8x1x4xf32>
    %c0_7 = arith.constant 0 : index
    %c0_8 = arith.constant 0 : index
    %c0_9 = arith.constant 0 : index
    %c0_10 = arith.constant 0 : index
    %2 = vector.load %arg0[%c0_7, %c0_8, %c0_9, %c0_10] : memref<2x8x4x8xf32, #tpu.memory_space<vmem>>, vector<2x8x4x8xf32>
    %3 = vector.extract_strided_slice %2 {offsets = [0, 0, 0, 0], sizes = [2, 8, 4, 4], strides = [1, 1, 1, 1]} : vector<2x8x4x8xf32> to vector<2x8x4x4xf32>
    %4 = vector.extract_strided_slice %2 {offsets = [0, 0, 0, 4], sizes = [2, 8, 4, 4], strides = [1, 1, 1, 1]} : vector<2x8x4x8xf32> to vector<2x8x4x4xf32>
    %5 = vector.broadcast %0 : vector<1x8x1x4xf32> to vector<2x8x4x4xf32>
    %6 = arith.mulf %3, %5 : vector<2x8x4x4xf32>
    %7 = vector.broadcast %1 : vector<1x8x1x4xf32> to vector<2x8x4x4xf32>
    %8 = arith.mulf %4, %7 : vector<2x8x4x4xf32>
    %9 = arith.subf %6, %8 : vector<2x8x4x4xf32>
    %c0_11 = arith.constant 0 : index
    %c0_12 = arith.constant 0 : index
    %c0_13 = arith.constant 0 : index
    %c0_14 = arith.constant 0 : index
    %10 = vector.load %arg4[%c0_11, %c0_12, %c0_13, %c0_14] : memref<2x8x4x8xf32, #tpu.memory_space<vmem>>, vector<2x8x4x4xf32>
    tpu.vector_store %arg4[%c0_11, %c0_12, %c0_13, %c0_14], %9 {strides = array<i32>} : memref<2x8x4x8xf32, #tpu.memory_space<vmem>>, vector<2x8x4x4xf32>,
    %11 = vector.broadcast %0 : vector<1x8x1x4xf32> to vector<2x8x4x4xf32>
    %12 = arith.mulf %4, %11 : vector<2x8x4x4xf32>
    %13 = vector.broadcast %1 : vector<1x8x1x4xf32> to vector<2x8x4x4xf32>
    %14 = arith.mulf %3, %13 : vector<2x8x4x4xf32>
    %15 = arith.addf %12, %14 : vector<2x8x4x4xf32>
    %c0_15 = arith.constant 0 : index
    %c0_16 = arith.constant 0 : index
    %c0_17 = arith.constant 0 : index
    %c4 = arith.constant 4 : index
    %16 = vector.load %arg4[%c0_15, %c0_16, %c0_17, %c4] : memref<2x8x4x8xf32, #tpu.memory_space<vmem>>, vector<2x8x4x4xf32>
    tpu.vector_store %arg4[%c0_15, %c0_16, %c0_17, %c4], %15 {strides = array<i32>} : memref<2x8x4x8xf32, #tpu.memory_space<vmem>>, vector<2x8x4x4xf32>,
    %c0_18 = arith.constant 0 : index
    %c0_19 = arith.constant 0 : index
    %c0_20 = arith.constant 0 : index
    %c0_21 = arith.constant 0 : index
    %17 = vector.load %arg1[%c0_18, %c0_19, %c0_20, %c0_21] : memref<2x8x2x8xf32, #tpu.memory_space<vmem>>, vector<2x8x2x8xf32>
    %18 = vector.extract_strided_slice %17 {offsets = [0, 0, 0, 0], sizes = [2, 8, 2, 4], strides = [1, 1, 1, 1]} : vector<2x8x2x8xf32> to vector<2x8x2x4xf32>
    %19 = vector.extract_strided_slice %17 {offsets = [0, 0, 0, 4], sizes = [2, 8, 2, 4], strides = [1, 1, 1, 1]} : vector<2x8x2x8xf32> to vector<2x8x2x4xf32>
    %20 = vector.broadcast %0 : vector<1x8x1x4xf32> to vector<2x8x2x4xf32>
    %21 = arith.mulf %18, %20 : vector<2x8x2x4xf32>
    %22 = vector.broadcast %1 : vector<1x8x1x4xf32> to vector<2x8x2x4xf32>
    %23 = arith.mulf %19, %22 : vector<2x8x2x4xf32>
    %24 = arith.subf %21, %23 : vector<2x8x2x4xf32>
    %c0_22 = arith.constant 0 : index
    %c0_23 = arith.constant 0 : index
    %c0_24 = arith.constant 0 : index
    %c0_25 = arith.constant 0 : index
    %25 = vector.load %arg5[%c0_22, %c0_23, %c0_24, %c0_25] : memref<2x8x2x8xf32, #tpu.memory_space<vmem>>, vector<2x8x2x4xf32>
    tpu.vector_store %arg5[%c0_22, %c0_23, %c0_24, %c0_25], %24 {strides = array<i32>} : memref<2x8x2x8xf32, #tpu.memory_space<vmem>>, vector<2x8x2x4xf32>,
    %26 = vector.broadcast %0 : vector<1x8x1x4xf32> to vector<2x8x2x4xf32>
    %27 = arith.mulf %19, %26 : vector<2x8x2x4xf32>
    %28 = vector.broadcast %1 : vector<1x8x1x4xf32> to vector<2x8x2x4xf32>
    %29 = arith.mulf %18, %28 : vector<2x8x2x4xf32>
    %30 = arith.addf %27, %29 : vector<2x8x2x4xf32>
    %c0_26 = arith.constant 0 : index
    %c0_27 = arith.constant 0 : index
    %c0_28 = arith.constant 0 : index
    %c4_29 = arith.constant 4 : index
    %31 = vector.load %arg5[%c0_26, %c0_27, %c0_28, %c4_29] : memref<2x8x2x8xf32, #tpu.memory_space<vmem>>, vector<2x8x2x4xf32>
    tpu.vector_store %arg5[%c0_26, %c0_27, %c0_28, %c4_29], %30 {strides = array<i32>} : memref<2x8x2x8xf32, #tpu.memory_space<vmem>>, vector<2x8x2x4xf32>,
    return
  }
}

</mosaic_0001>

<bundles_post_ra>
// kernel: llama_rotary_embedding.1
= control target key start
LH: loop header
LB: loop body
LE: loop exit
PB: predicated region body
PF: predicated region fallthrough
CT: control target
= control target key end

     0   :  { %11 = vsyncpa [#allocation3], 0  ;;  %s1595_s0 = inlined_call_operand.hbm [shape: f32[2,8,4,8], index: 0, kind: input, shape index: {}]   ;;  %s1596_s1 = inlined_call_operand.vmem [shape: f32[2,8,2,8], index: 1, kind: input, shape index: {}]   ;;  %s1597_s2 = inlined_call_operand.vmem [shape: f32[1,8,1,4], index: 2, kind: input, shape index: {}]   ;;  %s1598_s3 = inlined_call_operand.vmem [shape: f32[1,8,1,4], index: 3, kind: input, shape index: {}]   ;;  %s1599_s4 = inlined_call_operand.hbm [shape: f32[2,8,4,8], index: 4, kind: output, shape index: {0}]   ;;  %s1600_s5 = inlined_call_operand.hbm [shape: f32[2,8,2,8], index: 5, kind: output, shape index: {1}]  }
   0x1   :  { %12 = vsyncpa [#allocation4], 0 }
   0x2   :  { %13 = vsyncpa [#allocation7], 0  ;;  %s866_s18 = smov [#allocation2]  }
   0x3   :  { %s19_s19 = sshll.u32 %s866_s18, 4  ;;  %s20_s19 = int_to_ptr.vmem [resolvable:$true] %s19_s19 }
   0x4   :  { %s808_s20 = scalar_lea.vmem %s20_s19, 1024  ;;  %p813_p1 = scmp.lt.s32.totalorder %s20_s19, %s20_s19 }
   0x5   :  { %p809_p0 = scmp.ne.s32.totalorder %s20_s19, %s808_s20  ;;  %p814_p2 = scmp.lt.s32.totalorder %s808_s20, %s808_s20 }
   0x7   :  { %p815_p3 = por %p814_p2, %p813_p1 }
   0x9   :  { %p816_p4 = pnand %p815_p3, %p809_p0 }
   0xb   :  { %819 = shalt.err (!%p816_p4)
}
   0xc   :  { %s867_s21 = smov 64   ;;  %s868_s22 = smov 4  }
   0xd   :  { %25 = dma.hbm_to_vmem [thread:$0]  %s1595_s0, 1024, %s20_s19, [#allocation3], %s867_s21, %s867_s21, %s868_s22  }
   0xe   :  { %860 = dma.done.wait [#allocation3], 1024  }
   0xf   :  { %861 = vsyncadd [#allocation3], 4294966272  ;;  %v913_v0 = vld [vmem:[%s1598_s3] ss:$0 sm:$0xff]  ;;  %v918_v1 = vld [vmem:[%s1598_s3 + $0x2] ss:$0 sm:$0xff] }
  0x10   :  { %179 = vrot.lane.b32.xlu0 %v913_v0, %s868_s22  ;;  %183 = vrot.lane.b32.xlu1 %v918_v1, %s868_s22  ;;  %v927_v2 = vld [vmem:[%s1598_s3 + $0x1] ss:$0 sm:$0xff]  ;;  %v932_v3 = vld [vmem:[%s1598_s3 + $0x3] ss:$0 sm:$0xff]  ;;  %v1008_v14 = vld [vmem:[#allocation2 + $0x4] sm:$0xf] }
  0x11   :  { %v941_v4 = vld [vmem:[%s1598_s3 + $0x4] ss:$0 sm:$0xff]  ;;  %v946_v5 = vld [vmem:[%s1598_s3 + $0x5] ss:$0 sm:$0xff]  ;;  %v955_v6 = vld [vmem:[%s1598_s3 + $0x6] ss:$0 sm:$0xff]  ;;  %v357_v18 = vmul.f32 %v927_v2, %v1008_v14 }
  0x12   :  { %v960_v7 = vld [vmem:[%s1598_s3 + $0x7] ss:$0 sm:$0xff]  ;;  %v969_v8 = vld [vmem:[%s1597_s2 + $0x1] ss:$0 sm:$0xff]  ;;  %v974_v9 = vld [vmem:[%s1597_s2] ss:$0 sm:$0xff] }
  0x13   :  { %v983_v10 = vld [vmem:[%s1597_s2 + $0x3] ss:$0 sm:$0xff]  ;;  %v988_v11 = vld [vmem:[%s1597_s2 + $0x2] ss:$0 sm:$0xff]  ;;  %v997_v12 = vld [vmem:[%s1597_s2 + $0x5] ss:$0 sm:$0xff] }
  0x14   :  { %181 = vrot.lane.b32.xlu0 %v927_v2, %s868_s22  ;;  %185 = vrot.lane.b32.xlu1 %v932_v3, %s868_s22  ;;  %v1002_v13 = vld [vmem:[%s1597_s2 + $0x4] ss:$0 sm:$0xff]  ;;  %v1013_v15 = vld [vmem:[%s1597_s2 + $0x7] ss:$0 sm:$0xff]  ;;  %v1020_v17 = vld [vmem:[#allocation2] sm:$0xf] }
  0x15   :  { %v1018_v16 = vld [vmem:[%s1597_s2 + $0x6] ss:$0 sm:$0xff]  ;;  %v356_v19 = vmul.f32 %v913_v0, %v1020_v17  ;;  %v1030_v20 = vld [vmem:[#allocation2 + $0xc] sm:$0xf]  ;;  %v1032_v21 = vld [vmem:[#allocation2 + $0x8] sm:$0xf] }
  0x16   :  { %v359_v22 = vmul.f32 %v932_v3, %v1030_v20  ;;  %v358_v23 = vmul.f32 %v918_v1, %v1032_v21  ;;  %v1040_v24 = vld [vmem:[#allocation2 + $0x14] sm:$0xf]  ;;  %v1042_v25 = vld [vmem:[#allocation2 + $0x10] sm:$0xf]  ;;  %v1050_v28 = vld [vmem:[#allocation2 + $0x1c] sm:$0xf] }
  0x17   :  { %v361_v26 = vmul.f32 %v946_v5, %v1040_v24  ;;  %v360_v27 = vmul.f32 %v941_v4, %v1042_v25  ;;  %v1052_v29 = vld [vmem:[#allocation2 + $0x18] sm:$0xf]  ;;  %v363_v30 = vmul.f32 %v960_v7, %v1050_v28  ;;  %v1060_v32 = vld [vmem:[#allocation2 + $0x24] sm:$0xf]  ;;  %v1062_v33 = vld [vmem:[#allocation2 + $0x20] sm:$0xf] }
  0x18   :  { %187 = vrot.lane.b32.xlu0 %v941_v4, %s868_s22  ;;  %189 = vrot.lane.b32.xlu1 %v946_v5, %s868_s22  ;;  %v362_v31 = vmul.f32 %v955_v6, %v1052_v29  ;;  %v365_v34 = vmul.f32 %v927_v2, %v1060_v32  ;;  %v364_v35 = vmul.f32 %v913_v0, %v1062_v33  ;;  %v1070_v36 = vld [vmem:[#allocation2 + $0x2c] sm:$0xf]  ;;  %v1072_v37 = vld [vmem:[#allocation2 + $0x28] sm:$0xf]  ;;  %v1080_v40 = vld [vmem:[#allocation2 + $0x34] sm:$0xf] }
  0x19   :  { %v367_v38 = vmul.f32 %v932_v3, %v1070_v36  ;;  %v366_v39 = vmul.f32 %v918_v1, %v1072_v37  ;;  %v1082_v41 = vld [vmem:[#allocation2 + $0x30] sm:$0xf]  ;;  %v369_v42 = vmul.f32 %v946_v5, %v1080_v40  ;;  %v1090_v44 = vld [vmem:[#allocation2 + $0x3c] sm:$0xf]  ;;  %v1092_v45 = vld [vmem:[#allocation2 + $0x38] sm:$0xf] }
  0x1a   :  { %v368_v43 = vmul.f32 %v941_v4, %v1082_v41  ;;  %v371_v46 = vmul.f32 %v960_v7, %v1090_v44  ;;  %v370_v47 = vmul.f32 %v955_v6, %v1092_v45  ;;  %s869_s2 = smov 124   ;;  %vm299_vm0 = vcmask 27648  }
  0x1b   :  { %vm452_vm1 = vcmask 60448   ;;  %vm597_vm2 = vcmask 25600  }
  0x1c   :  { %191 = vrot.lane.b32.xlu0 %v955_v6, %s868_s22  ;;  %193 = vrot.lane.b32.xlu1 %v960_v7, %s868_s22 }
  0x20   :  { %318 = vrot.lane.b32.xlu1 %v969_v8, %s868_s22  ;;  %316 = vrot.lane.b32.xlu0 %v974_v9, %s868_s22 }
  0x24   :  { %322 = vrot.lane.b32.xlu1 %v983_v10, %s868_s22  ;;  %320 = vrot.lane.b32.xlu0 %v988_v11, %s868_s22 }
  0x28   :  { %326 = vrot.lane.b32.xlu1 %v997_v12, %s868_s22  ;;  %324 = vrot.lane.b32.xlu0 %v1002_v13, %s868_s22 }
  0x2c   :  { %330 = vrot.lane.b32.xlu1 %v1013_v15, %s868_s22  ;;  %328 = vrot.lane.b32.xlu0 %v1018_v16, %s868_s22 }
  0x30   :  { %390 = vrot.lane.b32.xlu1 %v357_v18, %s868_s22  ;;  %388 = vrot.lane.b32.xlu0 %v356_v19, %s868_s22 }
  0x34   :  { %394 = vrot.lane.b32.xlu1 %v359_v22, %s868_s22  ;;  %392 = vrot.lane.b32.xlu0 %v358_v23, %s868_s22 }
  0x38   :  { %398 = vrot.lane.b32.xlu1 %v361_v26, %s868_s22  ;;  %396 = vrot.lane.b32.xlu0 %v360_v27, %s868_s22 }
  0x3c   :  { %402 = vrot.lane.b32.xlu1 %v363_v30, %s868_s22  ;;  %400 = vrot.lane.b32.xlu0 %v362_v31, %s868_s22  ;;  %v1164_v31 = vld [vmem:[%s1596_s1] sm:$0x3] }
  0x40   :  { %406 = vrot.lane.b32.xlu1 %v365_v34, %s868_s22  ;;  %404 = vrot.lane.b32.xlu0 %v364_v35, %s868_s22 }
  0x44   :  { %410 = vrot.lane.b32.xlu1 %v367_v38, %s868_s22  ;;  %408 = vrot.lane.b32.xlu0 %v366_v39, %s868_s22  ;;  %v1175_v38 = vld [vmem:[%s1596_s1 + $0x2] sm:$0x3]  ;;  %v1180_v39 = vld [vmem:[%s1596_s1 + $0x4] sm:$0x3] }
  0x48   :  { %414 = vrot.lane.b32.xlu1 %v369_v42, %s868_s22  ;;  %412 = vrot.lane.b32.xlu0 %v368_v43, %s868_s22 }
  0x4c   :  { %418 = vrot.lane.b32.xlu1 %v371_v46, %s868_s22  ;;  %416 = vrot.lane.b32.xlu0 %v370_v47, %s868_s22  ;;  %v1191_v46 = vld [vmem:[%s1596_s1 + $0x6] sm:$0x3]  ;;  %v1196_v47 = vld [vmem:[%s1596_s1 + $0x8] sm:$0x3] }
  0x4d   :  { %1627 = vst [vmem:[#allocation11_spill] sm:$0xff] %v1191_v46  ;;  %1628 = vst [vmem:[#allocation12_spill] sm:$0xff] %v1196_v47 }
  0x82   :  { %v1102_v48 = vpop.permute.xlu0 %179  ;;  %v1104_v49 = vpop.permute.xlu1 %183 }
  0x83   :  { %v203_v50 = vmul.f32 %v1102_v48, %v1020_v17  ;;  %v205_v51 = vmul.f32 %v1104_v49, %v1032_v21  ;;  %v211_v18 = vmul.f32 %v1102_v48, %v1062_v33  ;;  %v213_v22 = vmul.f32 %v1104_v49, %v1072_v37 }
  0x84   :  { %v501_v35 = vmul.f32 %v1164_v31, %v1102_v48  ;;  %v503_v43 = vmul.f32 %v1180_v39, %v1104_v49 }
  0x85   :  { %235 = vrot.lane.b32.xlu0 %v203_v50, %s869_s2 }
  0x86   :  { %v1111_v52 = vpop.permute.xlu0 %181  ;;  %v1113_v53 = vpop.permute.xlu1 %185 }
  0x87   :  { %v204_v54 = vmul.f32 %v1111_v52, %v1008_v14  ;;  %v206_v55 = vmul.f32 %v1113_v53, %v1030_v20  ;;  %v212_v19 = vmul.f32 %v1111_v52, %v1060_v32  ;;  %v214_v23 = vmul.f32 %v1113_v53, %v1070_v36 }
  0x88   :  { %v502_v42 = vmul.f32 %v1175_v38, %v1111_v52  ;;  %v504_v50 = vmul.f32 %v1191_v46, %v1113_v53 }
  0x89   :  { %237 = vrot.lane.b32.xlu1 %v204_v54, %s869_s2  ;;  %239 = vrot.lane.b32.xlu0 %v205_v51, %s869_s2  ;;  %v1207_v54 = vld [vmem:[%s1596_s1 + $0xa] sm:$0x3] }
  0x8a   :  { %v1121_v56 = vpop.permute.xlu0 %187  ;;  %v1123_v57 = vpop.permute.xlu1 %189  ;;  %1629 = vst [vmem:[#allocation13_spill] sm:$0xff] %v1207_v54 }
  0x8b   :  { %v207_v58 = vmul.f32 %v1121_v56, %v1042_v25  ;;  %v208_v59 = vmul.f32 %v1123_v57, %v1040_v24  ;;  %v215_v26 = vmul.f32 %v1121_v56, %v1082_v41  ;;  %v216_v27 = vmul.f32 %v1123_v57, %v1080_v40 }
  0x8c   :  { %v505_v51 = vmul.f32 %v1196_v47, %v1121_v56 }
  0x8d   :  { %241 = vrot.lane.b32.xlu1 %v206_v55, %s869_s2  ;;  %243 = vrot.lane.b32.xlu0 %v207_v58, %s869_s2  ;;  %v1212_v55 = vld [vmem:[%s1596_s1 + $0xc] sm:$0x3]  ;;  %v506_v58 = vmul.f32 %v1207_v54, %v1123_v57 }
  0x8e   :  { %v1131_v60 = vpop.permute.xlu0 %191  ;;  %v1133_v61 = vpop.permute.xlu1 %193  ;;  %1630 = vst [vmem:[#allocation14_spill] sm:$0xff] %v1212_v55 }
  0x8f   :  { %v209_v62 = vmul.f32 %v1131_v60, %v1052_v29  ;;  %v210_v63 = vmul.f32 %v1133_v61, %v1050_v28  ;;  %v217_v30 = vmul.f32 %v1131_v60, %v1092_v45  ;;  %v218_v34 = vmul.f32 %v1133_v61, %v1090_v44 }
  0x91   :  { %245 = vrot.lane.b32.xlu1 %v208_v59, %s869_s2  ;;  %247 = vrot.lane.b32.xlu0 %v209_v62, %s869_s2  ;;  %v507_v59 = vmul.f32 %v1212_v55, %v1131_v60  ;;  %v1223_v62 = vld [vmem:[%s1596_s1 + $0xe] sm:$0x3] }
  0x92   :  { %1631 = vst [vmem:[#allocation15_spill] sm:$0xff] %v1223_v62 }
  0x95   :  { %249 = vrot.lane.b32.xlu1 %v210_v63, %s869_s2  ;;  %251 = vrot.lane.b32.xlu0 %v211_v18, %s869_s2  ;;  %v1228_v63 = vld [vmem:[%s1596_s1 + $0x10] sm:$0x3]  ;;  %v1230_v18 = vpop.permute.xlu0 %316 }
  0x96   :  { %1632 = vst [vmem:[#allocation16_spill] sm:$0xff] %v1228_v63 }
  0x99   :  { %253 = vrot.lane.b32.xlu1 %v212_v19, %s869_s2  ;;  %255 = vrot.lane.b32.xlu0 %v213_v22, %s869_s2  ;;  %v508_v19 = vmul.f32 %v1223_v62, %v1133_v61  ;;  %v509_v22 = vmul.f32 %v1228_v63, %v1102_v48 }
  0x9d   :  { %257 = vrot.lane.b32.xlu1 %v214_v23, %s869_s2  ;;  %259 = vrot.lane.b32.xlu0 %v215_v26, %s869_s2  ;;  %v1241_v23 = vld [vmem:[%s1596_s1 + $0x12] sm:$0x3]  ;;  %v1246_v26 = vld [vmem:[%s1596_s1 + $0x14] sm:$0x3] }
  0x9e   :  { %1633 = vst [vmem:[#allocation17_spill] sm:$0xff] %v1241_v23  ;;  %1634 = vst [vmem:[#allocation18_spill] sm:$0xff] %v1246_v26  ;;  %v510_v48 = vmul.f32 %v1241_v23, %v1111_v52 }
  0xa1   :  { %261 = vrot.lane.b32.xlu1 %v216_v27, %s869_s2  ;;  %263 = vrot.lane.b32.xlu0 %v217_v30, %s869_s2  ;;  %v1248_v27 = vpop.permute.xlu1 %318  ;;  %v1252_v30 = vpop.permute.xlu0 %320 }
  0xa5   :  { %265 = vrot.lane.b32.xlu1 %v218_v34, %s869_s2  ;;  %533 = vrot.lane.b32.xlu0 %v501_v35, %s869_s2  ;;  %v511_v34 = vmul.f32 %v1246_v26, %v1104_v49  ;;  %v1261_v35 = vld [vmem:[%s1596_s1 + $0x16] sm:$0x3] }
  0xa6   :  { %1635 = vst [vmem:[#allocation19_spill] sm:$0xff] %v1261_v35  ;;  %v512_v52 = vmul.f32 %v1261_v35, %v1113_v53 }
  0xa9   :  { %535 = vrot.lane.b32.xlu1 %v502_v42, %s869_s2  ;;  %537 = vrot.lane.b32.xlu0 %v503_v43, %s869_s2  ;;  %v1266_v42 = vld [vmem:[%s1596_s1 + $0x18] sm:$0x3]  ;;  %v1270_v43 = vpop.permute.xlu1 %322 }
  0xaa   :  { %1636 = vst [vmem:[#allocation20_spill] sm:$0xff] %v1266_v42  ;;  %v513_v49 = vmul.f32 %v1266_v42, %v1121_v56 }
  0xad   :  { %539 = vrot.lane.b32.xlu1 %v504_v50, %s869_s2  ;;  %541 = vrot.lane.b32.xlu0 %v505_v51, %s869_s2  ;;  %v1279_v50 = vld [vmem:[%s1596_s1 + $0x1a] sm:$0x3]  ;;  %v1284_v51 = vld [vmem:[%s1596_s1 + $0x1c] sm:$0x3] }
  0xae   :  { %1637 = vst [vmem:[#allocation21_spill] sm:$0xff] %v1279_v50  ;;  %1638 = vst [vmem:[#allocation22_spill] sm:$0xff] %v1284_v51  ;;  %v514_v53 = vmul.f32 %v1279_v50, %v1123_v57  ;;  %v515_v56 = vmul.f32 %v1284_v51, %v1131_v60  ;;  %v631_v60 = vmul.f32 %v927_v2, %v1175_v38 }
  0xb1   :  { %543 = vrot.lane.b32.xlu1 %v506_v58, %s869_s2  ;;  %545 = vrot.lane.b32.xlu0 %v507_v59, %s869_s2  ;;  %v1286_v58 = vpop.permute.xlu0 %324  ;;  %v1297_v59 = vld [vmem:[%s1596_s1 + $0x1e] sm:$0x3]  ;;  %s870_s1 = smov [#allocation5]  }
  0xb2   :  { %1639 = vst [vmem:[#allocation23_spill] sm:$0xff] %v1297_v59  ;;  %v516_v57 = vmul.f32 %v1297_v59, %v1133_v61  ;;  %v633_v61 = vmul.f32 %v932_v3, %v1191_v46 }
  0xb5   :  { %547 = vrot.lane.b32.xlu1 %v508_v19, %s869_s2  ;;  %549 = vrot.lane.b32.xlu0 %v509_v22, %s869_s2  ;;  %v1299_v19 = vpop.permute.xlu1 %326  ;;  %v630_v22 = vmul.f32 %v913_v0, %v1164_v31 }
  0xb9   :  { %551 = vrot.lane.b32.xlu1 %v510_v48, %s869_s2  ;;  %553 = vrot.lane.b32.xlu0 %v511_v34, %s869_s2  ;;  %v1305_v48 = vpop.permute.xlu0 %328  ;;  %v632_v34 = vmul.f32 %v918_v1, %v1180_v39 }
  0xbd   :  { %555 = vrot.lane.b32.xlu1 %v512_v52, %s869_s2  ;;  %557 = vrot.lane.b32.xlu0 %v513_v49, %s869_s2  ;;  %v1315_v52 = vpop.permute.xlu1 %330  ;;  %v389_v49 = vpop.permute.xlu0 %388 }
  0xc1   :  { %559 = vrot.lane.b32.xlu1 %v514_v53, %s869_s2  ;;  %561 = vrot.lane.b32.xlu0 %v515_v56, %s869_s2  ;;  %v634_v53 = vmul.f32 %v941_v4, %v1196_v47  ;;  %v391_v56 = vpop.permute.xlu1 %390  ;;  %v638_v47 = vmul.f32 %v913_v0, %v1228_v63  ;;  %v641_v0 = vmul.f32 %v932_v3, %v1261_v35 }
  0xc2   :  { %v645_v3 = vmul.f32 %v960_v7, %v1297_v59 }
  0xc5   :  { %563 = vrot.lane.b32.xlu1 %v516_v57, %s869_s2  ;;  %662 = vrot.lane.b32.xlu0 %v630_v22, %s868_s22  ;;  %v635_v22 = vmul.f32 %v946_v5, %v1207_v54  ;;  %v636_v57 = vmul.f32 %v955_v6, %v1212_v55  ;;  %v119_v55 = vmul.f32 %v1002_v13, %v1042_v25  ;;  %s748_s2 = sshll.u32 %s870_s1, 4  ;;  %s749_s2 = int_to_ptr.vmem [resolvable:$true] %s748_s2 }
  0xc6   :  { %s820_s13 = scalar_lea.vmem %s749_s2, 1024  ;;  %p825_p6 = scmp.lt.s32.totalorder %s749_s2, %s749_s2 }
  0xc7   :  { %p821_p5 = scmp.ne.s32.totalorder %s749_s2, %s820_s13  ;;  %p826_p7 = scmp.lt.s32.totalorder %s820_s13, %s820_s13 }
  0xc9   :  { %664 = vrot.lane.b32.xlu1 %v631_v60, %s868_s22  ;;  %666 = vrot.lane.b32.xlu0 %v632_v34, %s868_s22  ;;  %v393_v60 = vpop.permute.xlu0 %392  ;;  %v637_v34 = vmul.f32 %v960_v7, %v1223_v62  ;;  %v340_v7 = vmul.f32 %v1230_v18, %v1020_v17  ;;  %v118_v62 = vmul.f32 %v983_v10, %v1030_v20  ;;  %p827_p8 = por %p826_p7, %p825_p6 }
  0xcb   :  { %v436_v35 = vadd.f32 %v389_v49, %v340_v7  ;;  %p828_p9 = pnand %p827_p8, %p821_p5 }
  0xcd   :  { %668 = vrot.lane.b32.xlu1 %v633_v61, %s868_s22  ;;  %670 = vrot.lane.b32.xlu0 %v634_v53, %s868_s22  ;;  %v395_v61 = vpop.permute.xlu1 %394  ;;  %v1335_v46 = vpop.permute.xlu0 %396  ;;  %v639_v53 = vmul.f32 %v927_v2, %v1241_v23  ;;  %v644_v2 = vmul.f32 %v955_v6, %v1284_v51  ;;  %v116_v51 = vmul.f32 %v969_v8, %v1008_v14 }
  0xd1   :  { %672 = vrot.lane.b32.xlu1 %v635_v22, %s868_s22  ;;  %674 = vrot.lane.b32.xlu0 %v636_v57, %s868_s22  ;;  %v640_v22 = vmul.f32 %v918_v1, %v1246_v26  ;;  %v1343_v57 = vpop.permute.xlu1 %398  ;;  %v1351_v63 = vpop.permute.xlu0 %400  ;;  %v643_v1 = vmul.f32 %v946_v5, %v1279_v50  ;;  %v117_v50 = vmul.f32 %v988_v11, %v1032_v21 }
  0xd2   :  { %v342_v26 = vmul.f32 %v1252_v30, %v1032_v21  ;;  %v344_v21 = vmul.f32 %v1286_v58, %v1042_v25  ;;  %v345_v25 = vmul.f32 %v1299_v19, %v1040_v24 }
  0xd4   :  { %v438_v49 = vadd.f32 %v393_v60, %v342_v26 }
  0xd5   :  { %676 = vrot.lane.b32.xlu1 %v637_v34, %s868_s22  ;;  %678 = vrot.lane.b32.xlu0 %v638_v47, %s868_s22  ;;  %v642_v34 = vmul.f32 %v941_v4, %v1266_v42  ;;  %v1359_v47 = vpop.permute.xlu1 %402  ;;  %v341_v42 = vmul.f32 %v1248_v27, %v1008_v14  ;;  %v343_v14 = vmul.f32 %v1270_v43, %v1030_v20 }
  0xd6   :  { %v121_v20 = vmul.f32 %v1018_v16, %v1052_v29 }
  0xd7   :  { %v437_v54 = vadd.f32 %v391_v56, %v341_v42  ;;  %v120_v42 = vmul.f32 %v997_v12, %v1040_v24  ;;  %v439_v26 = vadd.f32 %v395_v61, %v343_v14  ;;  %v122_v24 = vmul.f32 %v1013_v15, %v1050_v28 }
  0xd8   :  { %v347_v61 = vmul.f32 %v1315_v52, %v1050_v28  ;;  %v124_v28 = vmul.f32 %v969_v8, %v1060_v32 }
  0xd9   :  { %680 = vrot.lane.b32.xlu1 %v639_v53, %s868_s22  ;;  %682 = vrot.lane.b32.xlu0 %v640_v22, %s868_s22  ;;  %v1361_v53 = vpop.permute.xlu0 %404  ;;  %v1367_v4 = vpop.permute.xlu1 %406 }
  0xdd   :  { %684 = vrot.lane.b32.xlu1 %v641_v0, %s868_s22  ;;  %686 = vrot.lane.b32.xlu0 %v642_v34, %s868_s22  ;;  %v1370_v22 = vpop.permute.xlu0 %408  ;;  %v1372_v5 = vpop.permute.xlu1 %410 }
  0xe1   :  { %688 = vrot.lane.b32.xlu1 %v643_v1, %s868_s22  ;;  %690 = vrot.lane.b32.xlu0 %v644_v2, %s868_s22  ;;  %v1374_v6 = vpop.permute.xlu0 %412  ;;  %v1376_v0 = vpop.permute.xlu1 %414  ;;  %v115_v1 = vmul.f32 %v974_v9, %v1020_v17 }
  0xe5   :  { %692 = vrot.lane.b32.xlu1 %v645_v3, %s868_s22  ;;  %v1378_v34 = vpop.permute.xlu0 %416  ;;  %v1384_v2 = vpop.permute.xlu1 %418 }
  0xf7   :  { %v236_v3 = vpop.permute.xlu0 %235 }
  0xf8   :  { %v283_v59 = vsub.f32 %v115_v1, %v236_v3 }
  0xfa   :  { %300 = vst.msk [vmem:[#allocation5] sm:$0xf] %vm299_vm0, %v283_v59  ;;  %v440_v59 = vadd.f32 %v1335_v46, %v344_v21  ;;  %v123_v46 = vmul.f32 %v974_v9, %v1062_v33 }
  0xfb   :  { %453 = vst.msk [vmem:[#allocation5] sm:$0xf] %vm452_vm1, %v436_v35  ;;  %v238_v17 = vpop.permute.xlu1 %237  ;;  %v240_v23 = vpop.permute.xlu0 %239 }
  0xfc   :  { %v284_v1 = vsub.f32 %v116_v51, %v238_v17  ;;  %v285_v3 = vsub.f32 %v117_v50, %v240_v23  ;;  %v348_v17 = vmul.f32 %v1230_v18, %v1062_v33  ;;  %v443_v33 = vadd.f32 %v1359_v47, %v347_v61 }
  0xfe   :  { %301 = vst.msk [vmem:[#allocation5 + $0x4] sm:$0xf] %vm299_vm0, %v284_v1  ;;  %302 = vst.msk [vmem:[#allocation5 + $0x8] sm:$0xf] %vm299_vm0, %v285_v3  ;;  %v444_v21 = vadd.f32 %v1361_v53, %v348_v17  ;;  %v127_v53 = vmul.f32 %v1002_v13, %v1082_v41 }
  0xff   :  { %454 = vst.msk [vmem:[#allocation5 + $0x4] sm:$0xf] %vm452_vm1, %v437_v54  ;;  %455 = vst.msk [vmem:[#allocation5 + $0x8] sm:$0xf] %vm452_vm1, %v438_v49  ;;  %v242_v23 = vpop.permute.xlu1 %241  ;;  %v244_v35 = vpop.permute.xlu0 %243  ;;  %v346_v54 = vmul.f32 %v1305_v48, %v1052_v29  ;;  %v441_v29 = vadd.f32 %v1343_v57, %v345_v25  ;;  %v349_v49 = vmul.f32 %v1248_v27, %v1060_v32 }
 0x100   :  { %v286_v50 = vsub.f32 %v118_v62, %v242_v23  ;;  %v287_v51 = vsub.f32 %v119_v55, %v244_v35  ;;  %v350_v23 = vmul.f32 %v1252_v30, %v1072_v37  ;;  %v126_v32 = vmul.f32 %v983_v10, %v1070_v36 }
 0x101   :  { %v442_v7 = vadd.f32 %v1351_v63, %v346_v54  ;;  %v125_v63 = vmul.f32 %v988_v11, %v1072_v37  ;;  %v445_v37 = vadd.f32 %v1367_v4, %v349_v49 }
 0x102   :  { %303 = vst.msk [vmem:[#allocation5 + $0xc] sm:$0xf] %vm299_vm0, %v286_v50  ;;  %304 = vst.msk [vmem:[#allocation5 + $0x10] sm:$0xf] %vm299_vm0, %v287_v51 }
 0x103   :  { %456 = vst.msk [vmem:[#allocation5 + $0xc] sm:$0xf] %vm452_vm1, %v439_v26  ;;  %457 = vst.msk [vmem:[#allocation5 + $0x10] sm:$0xf] %vm452_vm1, %v440_v59  ;;  %v246_v55 = vpop.permute.xlu1 %245  ;;  %v248_v62 = vpop.permute.xlu0 %247  ;;  %v352_v26 = vmul.f32 %v1286_v58, %v1082_v41 }
 0x104   :  { %v288_v56 = vsub.f32 %v120_v42, %v246_v55  ;;  %v289_v60 = vsub.f32 %v121_v20, %v248_v62  ;;  %v351_v42 = vmul.f32 %v1270_v43, %v1070_v36  ;;  %v446_v20 = vadd.f32 %v1370_v22, %v350_v23 }
 0x105   :  { %v128_v36 = vmul.f32 %v997_v12, %v1080_v40  ;;  %v129_v22 = vmul.f32 %v1018_v16, %v1092_v45  ;;  %v353_v55 = vmul.f32 %v1299_v19, %v1080_v40  ;;  %v448_v62 = vadd.f32 %v1374_v6, %v352_v26 }
 0x106   :  { %305 = vst.msk [vmem:[#allocation5 + $0x14] sm:$0xf] %vm299_vm0, %v288_v56  ;;  %306 = vst.msk [vmem:[#allocation5 + $0x18] sm:$0xf] %vm299_vm0, %v289_v60  ;;  %v447_v41 = vadd.f32 %v1372_v5, %v351_v42  ;;  %v354_v56 = vmul.f32 %v1305_v48, %v1092_v45  ;;  %v130_v40 = vmul.f32 %v1013_v15, %v1090_v44 }
 0x107   :  { %458 = vst.msk [vmem:[#allocation5 + $0x14] sm:$0xf] %vm452_vm1, %v441_v29  ;;  %459 = vst.msk [vmem:[#allocation5 + $0x18] sm:$0xf] %vm452_vm1, %v442_v7  ;;  %v250_v1 = vpop.permute.xlu1 %249  ;;  %v252_v3 = vpop.permute.xlu0 %251  ;;  %v485_v6 = vmul.f32 %v974_v9, %v1164_v31  ;;  %v449_v45 = vadd.f32 %v1376_v0, %v353_v55  ;;  %v355_v29 = vmul.f32 %v1315_v52, %v1090_v44 }
 0x108   :  { %v290_v14 = vsub.f32 %v122_v24, %v250_v1  ;;  %v291_v57 = vsub.f32 %v123_v46, %v252_v3  ;;  %v450_v61 = vadd.f32 %v1378_v34, %v354_v56  ;;  %v486_v44 = vmul.f32 %v969_v8, %v1175_v38 }
 0x109   :  { %v487_v34 = vmul.f32 %v988_v11, %v1180_v39  ;;  %v451_v3 = vadd.f32 %v1384_v2, %v355_v29 }
 0x10a   :  { %307 = vst.msk [vmem:[#allocation5 + $0x1c] sm:$0xf] %vm299_vm0, %v290_v14  ;;  %308 = vst.msk [vmem:[#allocation5 + $0x20] sm:$0xf] %vm299_vm0, %v291_v57 }
 0x10b   :  { %460 = vst.msk [vmem:[#allocation5 + $0x1c] sm:$0xf] %vm452_vm1, %v443_v33  ;;  %461 = vst.msk [vmem:[#allocation5 + $0x20] sm:$0xf] %vm452_vm1, %v444_v21  ;;  %v254_v35 = vpop.permute.xlu1 %253  ;;  %v256_v50 = vpop.permute.xlu0 %255  ;;  %v1640_v33 = vld [vmem:[#allocation11_spill] sm:$0xff]  ;;  %v1641_v21 = vld [vmem:[#allocation12_spill] sm:$0xff] }
 0x10c   :  { %v292_v51 = vsub.f32 %v124_v28, %v254_v35  ;;  %v293_v47 = vsub.f32 %v125_v63, %v256_v50  ;;  %v488_v49 = vmul.f32 %v983_v10, %v1640_v33  ;;  %v489_v23 = vmul.f32 %v1002_v13, %v1641_v21 }
 0x10e   :  { %309 = vst.msk [vmem:[#allocation5 + $0x24] sm:$0xf] %vm299_vm0, %v292_v51  ;;  %310 = vst.msk [vmem:[#allocation5 + $0x28] sm:$0xf] %vm299_vm0, %v293_v47 }
 0x10f   :  { %462 = vst.msk [vmem:[#allocation5 + $0x24] sm:$0xf] %vm452_vm1, %v445_v37  ;;  %463 = vst.msk [vmem:[#allocation5 + $0x28] sm:$0xf] %vm452_vm1, %v446_v20  ;;  %v258_v25 = vpop.permute.xlu1 %257  ;;  %v260_v59 = vpop.permute.xlu0 %259 }
 0x110   :  { %v294_v54 = vsub.f32 %v126_v32, %v258_v25  ;;  %v295_v4 = vsub.f32 %v127_v53, %v260_v59 }
 0x112   :  { %311 = vst.msk [vmem:[#allocation5 + $0x2c] sm:$0xf] %vm299_vm0, %v294_v54  ;;  %312 = vst.msk [vmem:[#allocation5 + $0x30] sm:$0xf] %vm299_vm0, %v295_v4 }
 0x113   :  { %464 = vst.msk [vmem:[#allocation5 + $0x2c] sm:$0xf] %vm452_vm1, %v447_v41  ;;  %465 = vst.msk [vmem:[#allocation5 + $0x30] sm:$0xf] %vm452_vm1, %v448_v62  ;;  %v262_v60 = vpop.permute.xlu1 %261  ;;  %v264_v24 = vpop.permute.xlu0 %263 }
 0x114   :  { %v296_v46 = vsub.f32 %v128_v36, %v262_v60  ;;  %v297_v5 = vsub.f32 %v129_v22, %v264_v24 }
 0x116   :  { %313 = vst.msk [vmem:[#allocation5 + $0x34] sm:$0xf] %vm299_vm0, %v296_v46  ;;  %314 = vst.msk [vmem:[#allocation5 + $0x38] sm:$0xf] %vm299_vm0, %v297_v5 }
 0x117   :  { %466 = vst.msk [vmem:[#allocation5 + $0x34] sm:$0xf] %vm452_vm1, %v449_v45  ;;  %467 = vst.msk [vmem:[#allocation5 + $0x38] sm:$0xf] %vm452_vm1, %v450_v61  ;;  %v266_v7 = vpop.permute.xlu1 %265  ;;  %v534_v17 = vpop.permute.xlu0 %533 }
 0x118   :  { %v298_v1 = vsub.f32 %v130_v40, %v266_v7  ;;  %v581_v0 = vsub.f32 %v485_v6, %v534_v17 }
 0x11a   :  { %315 = vst.msk [vmem:[#allocation5 + $0x3c] sm:$0xf] %vm299_vm0, %v298_v1 }
 0x11b   :  { %598 = vst.msk [vmem:[#allocation6] sm:$0x3] %vm597_vm2, %v581_v0  ;;  %v536_v14 = vpop.permute.xlu1 %535  ;;  %v538_v57 = vpop.permute.xlu0 %537 }
 0x11c   :  { %468 = vst.msk [vmem:[#allocation5 + $0x3c] sm:$0xf] %vm452_vm1, %v451_v3  ;;  %v582_v28 = vsub.f32 %v486_v44, %v536_v14  ;;  %v583_v63 = vsub.f32 %v487_v34, %v538_v57 }
 0x11d   :  { %831 = shalt.err (!%p828_p9)
}
 0x11e   :  { %754 = dma.vmem_to_hbm [thread:$0]  %s749_s2, 1024, %s1599_s4, [#allocation4], %s867_s21, %s867_s21, %s868_s22   ;;  %599 = vst.msk [vmem:[#allocation6 + $0x2] sm:$0x3] %vm597_vm2, %v582_v28  ;;  %600 = vst.msk [vmem:[#allocation6 + $0x4] sm:$0x3] %vm597_vm2, %v583_v63 }
 0x11f   :  { %v540_v2 = vpop.permute.xlu1 %539  ;;  %v542_v35 = vpop.permute.xlu0 %541  ;;  %v1642_v47 = vld [vmem:[#allocation13_spill] sm:$0xff]  ;;  %v1643_v53 = vld [vmem:[#allocation14_spill] sm:$0xff]  ;;  %v1644_v59 = vld [vmem:[#allocation15_spill] sm:$0xff]  ;;  %vm726_vm3 = vcmask 58400   ;;  %s871_s4 = smov [#allocation6]  }
 0x120   :  { %v584_v50 = vsub.f32 %v488_v49, %v540_v2  ;;  %v585_v51 = vsub.f32 %v489_v23, %v542_v35  ;;  %v490_v32 = vmul.f32 %v997_v12, %v1642_v47  ;;  %v491_v37 = vmul.f32 %v1018_v16, %v1643_v53  ;;  %v1645_v4 = vld [vmem:[#allocation16_spill] sm:$0xff]  ;;  %v1646_v56 = vld [vmem:[#allocation17_spill] sm:$0xff]  ;;  %v1647_v24 = vld [vmem:[#allocation18_spill] sm:$0xff]  ;;  %s760_s21 = sshll.u32 %s871_s4, 4  ;;  %s761_s21 = int_to_ptr.vmem [resolvable:$true] %s760_s21 }
 0x121   :  { %v492_v54 = vmul.f32 %v1013_v15, %v1644_v59  ;;  %v493_v36 = vmul.f32 %v974_v9, %v1645_v4  ;;  %v494_v60 = vmul.f32 %v969_v8, %v1646_v56  ;;  %v495_v46 = vmul.f32 %v988_v11, %v1647_v24  ;;  %v1648_v45 = vld [vmem:[#allocation19_spill] sm:$0xff]  ;;  %v1649_v61 = vld [vmem:[#allocation20_spill] sm:$0xff]  ;;  %v1650_v0 = vld [vmem:[#allocation21_spill] sm:$0xff]  ;;  %s840_s22 = scalar_lea.vmem %s761_s21, 512  ;;  %p845_p11 = scmp.lt.s32.totalorder %s761_s21, %s761_s21 }
 0x122   :  { %601 = vst.msk [vmem:[#allocation6 + $0x6] sm:$0x3] %vm597_vm2, %v584_v50  ;;  %602 = vst.msk [vmem:[#allocation6 + $0x8] sm:$0x3] %vm597_vm2, %v585_v51  ;;  %v496_v29 = vmul.f32 %v983_v10, %v1648_v45  ;;  %v497_v7 = vmul.f32 %v1002_v13, %v1649_v61  ;;  %v498_v44 = vmul.f32 %v997_v12, %v1650_v0  ;;  %v1651_v34 = vld [vmem:[#allocation22_spill] sm:$0xff]  ;;  %v1652_v28 = vld [vmem:[#allocation23_spill] sm:$0xff]  ;;  %p841_p10 = scmp.ne.s32.totalorder %s761_s21, %s840_s22  ;;  %p846_p12 = scmp.lt.s32.totalorder %s840_s22, %s840_s22 }
 0x123   :  { %v544_v42 = vpop.permute.xlu1 %543  ;;  %v546_v20 = vpop.permute.xlu0 %545  ;;  %v499_v3 = vmul.f32 %v1018_v16, %v1651_v34  ;;  %v500_v63 = vmul.f32 %v1013_v15, %v1652_v28  ;;  %v614_v12 = vmul.f32 %v1164_v31, %v1230_v18  ;;  %v615_v35 = vmul.f32 %v1175_v38, %v1248_v27 }
 0x124   :  { %v586_v26 = vsub.f32 %v490_v32, %v544_v42  ;;  %v587_v25 = vsub.f32 %v491_v37, %v546_v20  ;;  %v616_v15 = vmul.f32 %v1180_v39, %v1252_v30  ;;  %v617_v31 = vmul.f32 %v1640_v33, %v1270_v43  ;;  %p847_p13 = por %p846_p12, %p845_p11 }
 0x125   :  { %v618_v42 = vmul.f32 %v1641_v21, %v1286_v58  ;;  %v619_v39 = vmul.f32 %v1642_v47, %v1299_v19  ;;  %v621_v21 = vmul.f32 %v1644_v59, %v1315_v52 }
 0x126   :  { %603 = vst.msk [vmem:[#allocation6 + $0xa] sm:$0x3] %vm597_vm2, %v586_v26  ;;  %604 = vst.msk [vmem:[#allocation6 + $0xc] sm:$0x3] %vm597_vm2, %v587_v25  ;;  %p848_p0 = pnand %p847_p13, %p841_p10 }
 0x127   :  { %v548_v22 = vpop.permute.xlu1 %547  ;;  %v550_v41 = vpop.permute.xlu0 %549 }
 0x128   :  { %v588_v55 = vsub.f32 %v492_v54, %v548_v22  ;;  %v589_v62 = vsub.f32 %v493_v36, %v550_v41  ;;  %v620_v54 = vmul.f32 %v1643_v53, %v1305_v48  ;;  %v623_v53 = vmul.f32 %v1646_v56, %v1248_v27 }
 0x12a   :  { %605 = vst.msk [vmem:[#allocation6 + $0xe] sm:$0x3] %vm597_vm2, %v588_v55  ;;  %606 = vst.msk [vmem:[#allocation6 + $0x10] sm:$0x3] %vm597_vm2, %v589_v62  ;;  %v622_v55 = vmul.f32 %v1645_v4, %v1230_v18  ;;  %v625_v18 = vmul.f32 %v1648_v45, %v1270_v43  ;;  %v626_v4 = vmul.f32 %v1649_v61, %v1286_v58 }
 0x12b   :  { %v552_v5 = vpop.permute.xlu1 %551  ;;  %v554_v9 = vpop.permute.xlu0 %553  ;;  %v629_v58 = vmul.f32 %v1652_v28, %v1315_v52 }
 0x12c   :  { %v590_v40 = vsub.f32 %v494_v60, %v552_v5  ;;  %v591_v6 = vsub.f32 %v495_v46, %v554_v9  ;;  %v624_v5 = vmul.f32 %v1647_v24, %v1252_v30  ;;  %v627_v30 = vmul.f32 %v1650_v0, %v1299_v19 }
 0x12d   :  { %v628_v24 = vmul.f32 %v1651_v34, %v1305_v48 }
 0x12e   :  { %607 = vst.msk [vmem:[#allocation6 + $0x12] sm:$0x3] %vm597_vm2, %v590_v40  ;;  %608 = vst.msk [vmem:[#allocation6 + $0x14] sm:$0x3] %vm597_vm2, %v591_v6 }
 0x12f   :  { %v556_v8 = vpop.permute.xlu1 %555  ;;  %v558_v11 = vpop.permute.xlu0 %557 }
 0x130   :  { %v592_v17 = vsub.f32 %v496_v29, %v556_v8  ;;  %v593_v1 = vsub.f32 %v497_v7, %v558_v11 }
 0x132   :  { %609 = vst.msk [vmem:[#allocation6 + $0x16] sm:$0x3] %vm597_vm2, %v592_v17  ;;  %610 = vst.msk [vmem:[#allocation6 + $0x18] sm:$0x3] %vm597_vm2, %v593_v1 }
 0x133   :  { %v560_v10 = vpop.permute.xlu1 %559  ;;  %v562_v13 = vpop.permute.xlu0 %561 }
 0x134   :  { %v594_v14 = vsub.f32 %v498_v44, %v560_v10  ;;  %v595_v57 = vsub.f32 %v499_v3, %v562_v13 }
 0x136   :  { %611 = vst.msk [vmem:[#allocation6 + $0x1a] sm:$0x3] %vm597_vm2, %v594_v14  ;;  %612 = vst.msk [vmem:[#allocation6 + $0x1c] sm:$0x3] %vm597_vm2, %v595_v57 }
 0x137   :  { %v564_v49 = vpop.permute.xlu1 %563  ;;  %v663_v16 = vpop.permute.xlu0 %662 }
 0x138   :  { %v596_v23 = vsub.f32 %v500_v63, %v564_v49  ;;  %v710_v2 = vadd.f32 %v663_v16, %v614_v12 }
 0x13a   :  { %613 = vst.msk [vmem:[#allocation6 + $0x1e] sm:$0x3] %vm597_vm2, %v596_v23 }
 0x13b   :  { %727 = vst.msk [vmem:[#allocation6] sm:$0x3] %vm726_vm3, %v710_v2  ;;  %v665_v50 = vpop.permute.xlu1 %664  ;;  %v667_v51 = vpop.permute.xlu0 %666 }
 0x13c   :  { %v711_v32 = vadd.f32 %v665_v50, %v615_v35  ;;  %v712_v37 = vadd.f32 %v667_v51, %v616_v15 }
 0x13e   :  { %728 = vst.msk [vmem:[#allocation6 + $0x2] sm:$0x3] %vm726_vm3, %v711_v32  ;;  %729 = vst.msk [vmem:[#allocation6 + $0x4] sm:$0x3] %vm726_vm3, %v712_v37 }
 0x13f   :  { %v669_v20 = vpop.permute.xlu1 %668  ;;  %v671_v26 = vpop.permute.xlu0 %670 }
 0x140   :  { %v713_v38 = vadd.f32 %v669_v20, %v617_v31  ;;  %v714_v25 = vadd.f32 %v671_v26, %v618_v42 }
 0x142   :  { %730 = vst.msk [vmem:[#allocation6 + $0x6] sm:$0x3] %vm726_vm3, %v713_v38  ;;  %731 = vst.msk [vmem:[#allocation6 + $0x8] sm:$0x3] %vm726_vm3, %v714_v25 }
 0x143   :  { %v673_v36 = vpop.permute.xlu1 %672  ;;  %v675_v22 = vpop.permute.xlu0 %674 }
 0x144   :  { %v715_v33 = vadd.f32 %v673_v36, %v619_v39  ;;  %v716_v41 = vadd.f32 %v675_v22, %v620_v54 }
 0x146   :  { %732 = vst.msk [vmem:[#allocation6 + $0xa] sm:$0x3] %vm726_vm3, %v715_v33  ;;  %733 = vst.msk [vmem:[#allocation6 + $0xc] sm:$0x3] %vm726_vm3, %v716_v41 }
 0x147   :  { %v677_v62 = vpop.permute.xlu1 %676  ;;  %v679_v60 = vpop.permute.xlu0 %678 }
 0x148   :  { %v717_v47 = vadd.f32 %v677_v62, %v621_v21  ;;  %v718_v46 = vadd.f32 %v679_v60, %v622_v55 }
 0x14a   :  { %734 = vst.msk [vmem:[#allocation6 + $0xe] sm:$0x3] %vm726_vm3, %v717_v47  ;;  %735 = vst.msk [vmem:[#allocation6 + $0x10] sm:$0x3] %vm726_vm3, %v718_v46 }
 0x14b   :  { %v681_v9 = vpop.permute.xlu1 %680  ;;  %v683_v40 = vpop.permute.xlu0 %682 }
 0x14c   :  { %v719_v59 = vadd.f32 %v681_v9, %v623_v53  ;;  %v720_v6 = vadd.f32 %v683_v40, %v624_v5 }
 0x14e   :  { %736 = vst.msk [vmem:[#allocation6 + $0x12] sm:$0x3] %vm726_vm3, %v719_v59  ;;  %737 = vst.msk [vmem:[#allocation6 + $0x14] sm:$0x3] %vm726_vm3, %v720_v6 }
 0x14f   :  { %v685_v29 = vpop.permute.xlu1 %684  ;;  %v687_v7 = vpop.permute.xlu0 %686 }
 0x150   :  { %v721_v27 = vadd.f32 %v685_v29, %v625_v18  ;;  %v722_v56 = vadd.f32 %v687_v7, %v626_v4 }
 0x152   :  { %738 = vst.msk [vmem:[#allocation6 + $0x16] sm:$0x3] %vm726_vm3, %v721_v27  ;;  %739 = vst.msk [vmem:[#allocation6 + $0x18] sm:$0x3] %vm726_vm3, %v722_v56 }
 0x153   :  { %v689_v8 = vpop.permute.xlu1 %688  ;;  %v691_v11 = vpop.permute.xlu0 %690 }
 0x154   :  { %v723_v43 = vadd.f32 %v689_v8, %v627_v30  ;;  %v724_v45 = vadd.f32 %v691_v11, %v628_v24 }
 0x156   :  { %740 = vst.msk [vmem:[#allocation6 + $0x1a] sm:$0x3] %vm726_vm3, %v723_v43  ;;  %741 = vst.msk [vmem:[#allocation6 + $0x1c] sm:$0x3] %vm726_vm3, %v724_v45 }
 0x157   :  { %v693_v61 = vpop.permute.xlu1 %692 }
 0x158   :  { %v725_v17 = vadd.f32 %v693_v61, %v629_v58 }
 0x15a   :  { %742 = vst.msk [vmem:[#allocation6 + $0x1e] sm:$0x3] %vm726_vm3, %v725_v17 }
 0x15b   :  { %851 = shalt.err (!%p848_p0)
}
 0x15c   :  { %s872_s16 = smov 32   ;;  %s873_s17 = smov 2  }
 0x15d   :  { %766 = dma.vmem_to_hbm [thread:$0]  %s761_s21, 512, %s1600_s5, [#allocation7], %s872_s16, %s872_s16, %s873_s17  }
 0x15e   :  { %862 = dma.done.wait [#allocation4], 1024  }
 0x15f   :  { %863 = vsyncadd [#allocation4], 4294966272 }
 0x160   :  { %864 = dma.done.wait [#allocation7], 512  }
 0x161   :  { %865 = vsyncadd [#allocation7], 4294966784 }
 0x162   :  { %773 = vsyncpa [#allocation3], 1 }
 0x163   :  { %774 = vsyncpa [#allocation4], 1 }
 0x164   :  { %775 = vsyncpa [#allocation7], 1 }

</bundles_post_ra>
